<compile_context>
chip_gen: v7x
topology: tpu7x:2x2x1
jax: 0.10.0
libtpu: 0.0.40
codegen_flags: <defaults>
</compile_context>

<pallas_src>
import math
from functools import partial

import jax
import jax.numpy as jnp
from jax.experimental import pallas as pl
from jax.experimental.pallas import tpu as pltpu

# Safe everywhere (v7x has 64 MiB/TC physical); raise to 64-96 MiB on v5e/v6e for big tiles.
VMEM_LIMIT_BYTES = 32 * 1024 * 1024
ACT_DTYPE = jnp.bfloat16  # inter-kernel activation dtype (HBM traffic)


def _cparams(*sems):
    return pltpu.CompilerParams(dimension_semantics=sems,
                                vmem_limit_bytes=VMEM_LIMIT_BYTES)


def _tile_rows(m, pref=512):
    """Row tile: a multiple of 8 dividing m (enables pipelining), else the full dim."""
    if m <= pref:
        return m
    for t in (pref, 256, 128, 64, 32, 16, 8):
        if m % t == 0:
            return t
    return m


def _tile_cols(n, pref=512):
    """Lane tile: a multiple of 128 dividing n, else the full dim."""
    if n <= pref:
        return n
    for t in (512, 384, 256, 128):
        if n % t == 0:
            return t
    return n


def _causal_shift_rows(y, s):
    """out[l] = y[l - s] for l >= s, else 0.  In-VMEM zero-pad + slice (direction-safe)."""
    if s == 0:
        return y
    L = y.shape[0]
    zeros = jnp.zeros((s,) + y.shape[1:], y.dtype)
    return jnp.concatenate([zeros, y[:L - s]], axis=0)


# ----------------------------------------------------------------------------
# Pallas kernels
# ----------------------------------------------------------------------------
def _linear_kernel(x_ref, w_ref, b_ref, o_ref):
    x = x_ref[...].astype(jnp.bfloat16)
    y = jnp.dot(x, w_ref[...], preferred_element_type=jnp.float32) + b_ref[...]
    o_ref[...] = y.astype(o_ref.dtype)


def _linear_add_kernel(x_ref, w_ref, b_ref, a_ref, o_ref):
    # Linear fused with a residual add (avoids one extra sub-128-lane HBM pass for small D).
    x = x_ref[...].astype(jnp.bfloat16)
    y = jnp.dot(x, w_ref[...], preferred_element_type=jnp.float32) + b_ref[...]
    o_ref[...] = (y + a_ref[...].astype(jnp.float32)).astype(o_ref.dtype)


def _layernorm_kernel(x_ref, w_ref, b_ref, o_ref, *, eps):
    x = x_ref[...].astype(jnp.float32)
    mean = jnp.mean(x, axis=-1, keepdims=True)
    xc = x - mean
    var = jnp.mean(xc * xc, axis=-1, keepdims=True)
    o_ref[...] = (xc * jax.lax.rsqrt(var + eps) * w_ref[...] + b_ref[...]).astype(o_ref.dtype)


def _rmsnorm_linear_kernel(x_ref, g_ref, w_ref, b_ref, o_ref, *, eps):
    # Fused RMSNorm -> Linear (saves one full-activation HBM round trip per block).
    x = x_ref[...].astype(jnp.float32)
    ms = jnp.mean(x * x, axis=-1, keepdims=True)
    h = (x * jax.lax.rsqrt(ms + eps) * g_ref[...]).astype(jnp.bfloat16)
    y = jnp.dot(h, w_ref[...], preferred_element_type=jnp.float32)
    o_ref[...] = (y + b_ref[...]).astype(o_ref.dtype)


def _rmsnorm_gated_mlp_kernel(x_ref, g_ref, wy_ref, by_ref, wg_ref, bg_ref,
                              w2_ref, b2_ref, o_ref, *, eps):
    # Fused RMSNorm -> GatedMLP (value/gate matmuls + SiLU gate + output matmul).
    x = x_ref[...].astype(jnp.float32)
    ms = jnp.mean(x * x, axis=-1, keepdims=True)
    h = (x * jax.lax.rsqrt(ms + eps) * g_ref[...]).astype(jnp.bfloat16)
    y = jnp.dot(h, wy_ref[...], preferred_element_type=jnp.float32) + by_ref[...]
    g = jnp.dot(h, wg_ref[...], preferred_element_type=jnp.float32) + bg_ref[...]
    hg = (y * (g * jax.nn.sigmoid(g))).astype(jnp.bfloat16)
    out = jnp.dot(hg, w2_ref[...], preferred_element_type=jnp.float32) + b2_ref[...]
    o_ref[...] = out.astype(o_ref.dtype)


def _causal_conv_silu_kernel(x_ref, w_ref, b_ref, o_ref, *, K):
    # Depthwise causal conv1d over L, then SiLU.  One in-VMEM zero-pad, K static slices.
    x = x_ref[...].astype(jnp.float32)                          # (L, C)
    L = x.shape[0]
    xp = jnp.concatenate([jnp.zeros((K - 1, x.shape[1]), jnp.float32), x], axis=0)
    acc = jnp.zeros_like(x) + b_ref[...]
    for k in range(K):
        acc = acc + xp[k:k + L, :] * w_ref[k:k + 1, :]
    o_ref[...] = (acc * jax.nn.sigmoid(acc)).astype(o_ref.dtype)


def _uppool_shift_kernel(x_ref, w_ref, b_ref, o_ref):
    # Fused UpPool linear + causal time shift (F.pad(y[..., :-1], (1, 0))).
    x = x_ref[...].astype(jnp.bfloat16)                         # (L, d_in)
    y = jnp.dot(x, w_ref[...], preferred_element_type=jnp.float32) + b_ref[...]
    o_ref[...] = _causal_shift_rows(y, 1).astype(o_ref.dtype)


def _mamba_scan_kernel(u_ref, z_ref, wbc_ref, bbc_ref, wdtl_ref, wdt_ref, bdt_ref,
                       at_ref, d_ref, o_ref, dtsp_ref, bc_ref, *, N, CH):
    """Fused x_proj + dt_proj + selective scan + D-skip + SiLU(z) gate for one batch row."""
    L = dtsp_ref.shape[0]

    # ---- vectorized prologue (off the sequential critical path) ----
    u_bf = u_ref[...].astype(jnp.bfloat16)                                    # (L, di)
    bc_ref[...] = (jnp.dot(u_bf, wbc_ref[...], preferred_element_type=jnp.float32)
                   + bbc_ref[...])                                            # (L, 2N) f32
    dt_low = jnp.dot(u_bf, wdtl_ref[...], preferred_element_type=jnp.float32)  # (L, R)
    dt = (jnp.dot(dt_low.astype(jnp.bfloat16), wdt_ref[...],
                  preferred_element_type=jnp.float32) + bdt_ref[...])
    dtsp_ref[...] = jax.nn.softplus(dt)                                       # (L, di) f32

    at = at_ref[...]                                                          # (N, di) f32
    dsk = d_ref[...]                                                          # (1, di) f32

    # ---- chunked recurrence: one slab load / transpose / dense store per CH steps ----
    def chunk_body(c, h):
        t0 = pl.multiple_of(c * CH, CH)
        dt_c = dtsp_ref[pl.ds(t0, CH), :]                                     # (CH, di)
        u_c = u_ref[pl.ds(t0, CH), :].astype(jnp.float32)                     # (CH, di)
        z_c = z_ref[pl.ds(t0, CH), :].astype(jnp.float32)                     # (CH, di)
        dtu_c = dt_c * u_c
        bct = jnp.transpose(bc_ref[pl.ds(t0, CH), :])                         # (2N, CH)
        ys = []
        for k in range(CH):  # static unroll: exp() terms are h-independent -> co-issue
            dA = jnp.exp(dt_c[k:k + 1, :] * at)                               # (N, di)
            h = dA * h + dtu_c[k:k + 1, :] * bct[:N, k:k + 1]                 # (N, di)
            ys.append(jnp.sum(h * bct[N:, k:k + 1], axis=0, keepdims=True))   # (1, di)
        y_c = jnp.concatenate(ys, axis=0) + u_c * dsk                         # (CH, di)
        o_ref[pl.ds(t0, CH), :] = (y_c * (z_c * jax.nn.sigmoid(z_c))).astype(o_ref.dtype)
        return h

    jax.lax.fori_loop(0, L // CH, chunk_body, jnp.zeros(at_ref.shape, jnp.float32))


# ----------------------------------------------------------------------------
# Pallas wrappers (tiled pallas_call with grids / BlockSpecs)
# ----------------------------------------------------------------------------
def pallas_linear(x, w, b, add=None):
    """x: (..., K) @ w: (K, N) + b (+ optional fused residual add) -> (..., N)."""
    # TODO(synk): K-tiled f32 accumulator path for very large K (deep DownPool/UpPool levels).
    shp = x.shape
    K = shp[-1]
    Nout = w.shape[1]
    x2 = x.reshape(-1, K)
    M = x2.shape[0]
    tm, tn = _tile_rows(M), _tile_cols(Nout)
    in_specs = [pl.BlockSpec((tm, K), lambda i, j: (i, 0)),
                pl.BlockSpec((K, tn), lambda i, j: (0, j)),
                pl.BlockSpec((1, tn), lambda i, j: (0, j))]
    args = [x2, w, b]
    kern = _linear_kernel
    if add is not None:
        in_specs.append(pl.BlockSpec((tm, tn), lambda i, j: (i, j)))
        args.append(add.reshape(-1, Nout))
        kern = _linear_add_kernel
    out = pl.pallas_call(
        kern,
        grid=(M // tm, Nout // tn),
        in_specs=in_specs,
        out_specs=pl.BlockSpec((tm, tn), lambda i, j: (i, j)),
        out_shape=jax.ShapeDtypeStruct((M, Nout), x.dtype),
        compiler_params=_cparams("parallel", "parallel"),
    )(*args)
    return out.reshape(shp[:-1] + (Nout,))


def pallas_layernorm(x, w, b, eps=1e-5, out_dtype=None):
    if out_dtype is None:
        out_dtype = x.dtype
    shp = x.shape
    D = shp[-1]
    x2 = x.reshape(-1, D)
    M = x2.shape[0]
    tm = _tile_rows(M)
    out = pl.pallas_call(
        partial(_layernorm_kernel, eps=eps),
        grid=(M // tm,),
        in_specs=[pl.BlockSpec((tm, D), lambda i: (i, 0)),
                  pl.BlockSpec((1, D), lambda i: (0, 0)),
                  pl.BlockSpec((1, D), lambda i: (0, 0))],
        out_specs=pl.BlockSpec((tm, D), lambda i: (i, 0)),
        out_shape=jax.ShapeDtypeStruct((M, D), out_dtype),
        compiler_params=_cparams("parallel"),
    )(x2, w, b)
    return out.reshape(shp)


def rmsnorm_linear(x, g, w, b, eps=1e-5):
    shp = x.shape
    D = shp[-1]
    Nout = w.shape[1]
    x2 = x.reshape(-1, D)
    M = x2.shape[0]
    tm, tn = _tile_rows(M), _tile_cols(Nout)
    out = pl.pallas_call(
        partial(_rmsnorm_linear_kernel, eps=eps),
        grid=(M // tm, Nout // tn),
        in_specs=[pl.BlockSpec((tm, D), lambda i, j: (i, 0)),
                  pl.BlockSpec((1, D), lambda i, j: (0, 0)),
                  pl.BlockSpec((D, tn), lambda i, j: (0, j)),
                  pl.BlockSpec((1, tn), lambda i, j: (0, j))],
        out_specs=pl.BlockSpec((tm, tn), lambda i, j: (i, j)),
        out_shape=jax.ShapeDtypeStruct((M, Nout), x.dtype),
        compiler_params=_cparams("parallel", "parallel"),
    )(x2, g, w, b)
    return out.reshape(shp[:-1] + (Nout,))


def rmsnorm_gated_mlp(x, g, p, eps=1e-5):
    shp = x.shape
    D = shp[-1]
    hid = p['wy'].shape[1]
    Nout = p['w2'].shape[1]
    x2 = x.reshape(-1, D)
    M = x2.shape[0]
    tm = _tile_rows(M)
    out = pl.pallas_call(
        partial(_rmsnorm_gated_mlp_kernel, eps=eps),
        grid=(M // tm,),
        in_specs=[pl.BlockSpec((tm, D), lambda i: (i, 0)),
                  pl.BlockSpec((1, D), lambda i: (0, 0)),
                  pl.BlockSpec((D, hid), lambda i: (0, 0)),
                  pl.BlockSpec((1, hid), lambda i: (0, 0)),
                  pl.BlockSpec((D, hid), lambda i: (0, 0)),
                  pl.BlockSpec((1, hid), lambda i: (0, 0)),
                  pl.BlockSpec((hid, Nout), lambda i: (0, 0)),
                  pl.BlockSpec((1, Nout), lambda i: (0, 0))],
        out_specs=pl.BlockSpec((tm, Nout), lambda i: (i, 0)),
        out_shape=jax.ShapeDtypeStruct((M, Nout), x.dtype),
        compiler_params=_cparams("parallel"),
    )(x2, g, p['wy'], p['by'], p['wg'], p['bg'], p['w2'], p['b2'])
    return out.reshape(shp[:-1] + (Nout,))


def causal_conv_silu(x, w, b):
    """Depthwise causal conv1d over L then SiLU. x: (B, L, C), w: (K, C), b: (1, C)."""
    # TODO(synk): L-tiling with a (K-1)-row halo for very long sequences on v7x.
    bsz, L, C = x.shape
    K = w.shape[0]
    return pl.pallas_call(
        partial(_causal_conv_silu_kernel, K=K),
        grid=(bsz,),
        in_specs=[pl.BlockSpec((None, L, C), lambda i: (i, 0, 0)),
                  pl.BlockSpec((K, C), lambda i: (0, 0)),
                  pl.BlockSpec((1, C), lambda i: (0, 0))],
        out_specs=pl.BlockSpec((None, L, C), lambda i: (i, 0, 0)),
        out_shape=jax.ShapeDtypeStruct((bsz, L, C), x.dtype),
        compiler_params=_cparams("parallel"),
    )(x, w, b)


def mamba_scan(u, z, p):
    """Fused x_proj + dt_proj + selective scan + D-skip + SiLU(z) gate.
    u/z: (B, L, di).  Weights: w_bc (di,2N) bf16, w_dtl (di,R) bf16, w_dt (R,di) bf16."""
    B_, L, di = u.shape
    N = p['At'].shape[0]
    two_n = 2 * N
    R = p['w_dtl'].shape[1]
    CH = next(c for c in (8, 4, 2, 1) if L % c == 0)  # 8-step chunks when possible
    # TODO(synk): add a di-tile grid axis (grid=(B, di//tile)) for v7x 64 MiB VMEM at long L.
    return pl.pallas_call(
        partial(_mamba_scan_kernel, N=N, CH=CH),
        grid=(B_,),
        in_specs=[pl.BlockSpec((None, L, di), lambda i: (i, 0, 0)),   # u (conv output)
                  pl.BlockSpec((None, L, di), lambda i: (i, 0, 0)),   # z (gate)
                  pl.BlockSpec((di, two_n), lambda i: (0, 0)),        # W_BC (bf16)
                  pl.BlockSpec((1, two_n), lambda i: (0, 0)),         # b_BC
                  pl.BlockSpec((di, R), lambda i: (0, 0)),            # W_dt_lowrank (bf16)
                  pl.BlockSpec((R, di), lambda i: (0, 0)),            # W_dt (bf16)
                  pl.BlockSpec((1, di), lambda i: (0, 0)),            # b_dt
                  pl.BlockSpec((N, di), lambda i: (0, 0)),            # A^T (negated, f32)
                  pl.BlockSpec((1, di), lambda i: (0, 0))],           # D skip
        out_specs=pl.BlockSpec((None, L, di), lambda i: (i, 0, 0)),
        out_shape=jax.ShapeDtypeStruct((B_, L, di), u.dtype),
        scratch_shapes=[pltpu.VMEM((L, di), jnp.float32),      # softplus(dt)
                        pltpu.VMEM((L, two_n), jnp.float32)],  # [B | C]
        compiler_params=_cparams("parallel"),
    )(u, z, p['w_bc'], p['b_bc'], p['w_dtl'], p['w_dt'], p['b_dt'], p['At'], p['Dskip'])


# ----------------------------------------------------------------------------
# Module forwards (JAX glue around Pallas kernels)
# ----------------------------------------------------------------------------
def downpool_fwd(x, p):
    # rearrange '... (l s) h -> ... l (h s)' then Linear
    pool = p['pool']
    bsz, L, H = x.shape
    x = x.reshape(bsz, L // pool, pool, H).transpose(0, 1, 3, 2).reshape(bsz, L // pool, H * pool)
    return pallas_linear(x, p['w'], p['b'])


def uppool_fwd(x, p):
    # Fused Linear + causal shift, then rearrange '... l (h s) -> ... (l s) h'
    pool = p['pool']
    bsz, L, Din = x.shape
    C = p['w'].shape[1]
    y = pl.pallas_call(
        _uppool_shift_kernel,
        grid=(bsz,),
        in_specs=[pl.BlockSpec((None, L, Din), lambda i: (i, 0, 0)),
                  pl.BlockSpec((Din, C), lambda i: (0, 0)),
                  pl.BlockSpec((1, C), lambda i: (0, 0))],
        out_specs=pl.BlockSpec((None, L, C), lambda i: (i, 0, 0)),
        out_shape=jax.ShapeDtypeStruct((bsz, L, C), x.dtype),
        compiler_params=_cparams("parallel"),
    )(x, p['w'], p['b'])
    d_out = C // pool
    return y.reshape(bsz, L, d_out, pool).transpose(0, 1, 3, 2).reshape(bsz, L * pool, d_out)


def mamba_fwd(residual, norm_w, p):
    """Fused RMSNorm + Mamba mixer; returns mixer(residual) + residual (fused add)."""
    di = p['in_w'].shape[1] // 2
    xz = rmsnorm_linear(residual, norm_w, p['in_w'], p['in_b'])   # fused RMSNorm + in_proj
    xpart, z = xz[..., :di], xz[..., di:]
    xconv = causal_conv_silu(xpart, p['conv_w'], p['conv_b'])     # (B, L, di)
    y = mamba_scan(xconv, z, p)                                    # fused xproj/dtproj/scan/gate
    return pallas_linear(y, p['out_w'], p['out_b'], add=residual)  # out_proj + residual add


def block_fwd(x, residual, p):
    # mamba_ssm Block, fused_add_norm=False, residual_in_fp32=False, mlp=GatedMLP
    residual = x if residual is None else x + residual
    new_residual = mamba_fwd(residual, p['norm_w'], p['mixer'])    # = mixer(norm(res)) + res
    out = rmsnorm_gated_mlp(new_residual, p['norm2_w'], p['mlp'])
    return out, new_residual


def hybrid_sashimi_forward(params, x):
    """input: (B, L, d_model) -> output: (B, L, d_model). Mirrors HybridSashimi.forward
    with unet=False, outermost_s4=False (default config)."""
    in_dtype = x.dtype
    x = x.astype(ACT_DTYPE)                 # bf16 activations between kernels
    outputs = [x]
    residual = None
    for dp in params['d_layers']:           # DownPools (not Blocks)
        if residual is not None:
            x = x + residual
        x = downpool_fwd(x, dp)
        outputs.append(x)
        residual = None
    if residual is not None:
        x = x + residual
    residual = None
    for blk in params['c_layers']:          # all Mamba Blocks
        x, residual = block_fwd(x, residual, blk)
    x = x + residual
    x = x + outputs.pop()
    for ublock in params['u_layers']:
        residual = None
        for layer in ublock:
            if layer['type'] == 'uppool':
                x = uppool_fwd(x, layer)
                x = x + outputs.pop()
                outputs.append(x)
            else:
                x, residual = block_fwd(x, residual, layer)
        x = x + residual
        x = x + outputs.pop()
    return pallas_layernorm(x, params['norm_w'], params['norm_b'], out_dtype=in_dtype)


# ----------------------------------------------------------------------------
# Deterministic parameter init (synthetic, matching __init__ shapes)
# ----------------------------------------------------------------------------
def _dense_init(key, din, dout, w_dtype=jnp.bfloat16):
    scale = 1.0 / math.sqrt(din)
    w = (scale * jax.random.normal(key, (din, dout), jnp.float32)).astype(w_dtype)
    b = jnp.zeros((1, dout), jnp.float32)
    return w, b


def init_mamba(key, D, d_state, d_conv, dt_rank, expand=2):
    di = expand * D
    ks = jax.random.split(key, 6)
    in_w, in_b = _dense_init(ks[0], D, 2 * di)
    conv_w = 0.3 * jax.random.normal(ks[1], (d_conv, di), jnp.float32)
    conv_b = jnp.zeros((1, di), jnp.float32)
    w_bc, b_bc = _dense_init(ks[2], di, 2 * d_state)
    w_dtl, _ = _dense_init(ks[3], di, dt_rank)
    w_dt, b_dt = _dense_init(ks[4], dt_rank, di)
    b_dt = b_dt - 2.0  # softplus(-2) ~ 0.127 -> well-conditioned decay rates
    A_log = jnp.log(jnp.broadcast_to(
        jnp.arange(1, d_state + 1, dtype=jnp.float32)[None, :], (di, d_state)))
    At = -jnp.exp(A_log).T                                         # (N, di), precomputed once
    out_w, out_b = _dense_init(ks[5], di, D)
    return {
        'in_w': in_w, 'in_b': in_b,
        'conv_w': conv_w, 'conv_b': conv_b,
        'w_bc': w_bc, 'b_bc': b_bc,
        'w_dtl': w_dtl, 'w_dt': w_dt, 'b_dt': b_dt,
        'At': At, 'Dskip': jnp.ones((1, di), jnp.float32),
        'out_w': out_w, 'out_b': out_b,
    }


def init_block(key, D, d_model, ff, d_state, d_conv):
    ks = jax.random.split(key, 3)
    dt_rank = math.ceil(D / 16)
    hid = ff * d_model  # GatedMLP hidden_features = ff * d_model (outer d_model)
    fc1_w, fc1_b = _dense_init(ks[1], D, 2 * hid)
    fc2_w, fc2_b = _dense_init(ks[2], hid, D)
    return {
        'type': 'block',
        'norm_w': jnp.ones((1, D), jnp.float32),
        'norm2_w': jnp.ones((1, D), jnp.float32),
        'mixer': init_mamba(ks[0], D, d_state, d_conv, dt_rank),
        'mlp': {'wy': fc1_w[:, :hid], 'by': fc1_b[:, :hid],
                'wg': fc1_w[:, hid:], 'bg': fc1_b[:, hid:],
                'w2': fc2_w, 'b2': fc2_b},
    }


def init_hybrid_sashimi(key, d_model, n_layers, pool, expand, ff, d_conv, d_state):
    keys = iter(jax.random.split(key, 128))
    H = d_model
    d_layers = []
    for p in pool:
        w, b = _dense_init(next(keys), H * p, H * expand)
        d_layers.append({'type': 'downpool', 'pool': p, 'w': w, 'b': b})
        H *= expand
    c_layers = [init_block(next(keys), H, d_model, ff, d_state, d_conv)
                for _ in range(n_layers)]
    u_layers = []
    for p in pool[::-1]:
        block = []
        H //= expand
        w, b = _dense_init(next(keys), H * expand, H * p)  # UpPool: Linear(d_in, d_out*pool)
        block.append({'type': 'uppool', 'pool': p, 'w': w, 'b': b})
        for _ in range(n_layers):
            block.append(init_block(next(keys), H, d_model, ff, d_state, d_conv))
        u_layers.append(block)
    assert H == d_model
    return {
        'd_layers': d_layers, 'c_layers': c_layers, 'u_layers': u_layers,
        'norm_w': jnp.ones((1, H), jnp.float32),
        'norm_b': jnp.zeros((1, H), jnp.float32),
    }


# ----------------------------------------------------------------------------
if __name__ == "__main__":
    key = jax.random.PRNGKey(0)
    pkey, xkey = jax.random.split(key)

    cfg = dict(d_model=16, n_layers=2, pool=(2, 2), expand=2, ff=2, d_conv=4, d_state=64)
    params = init_hybrid_sashimi(pkey, **cfg)

    B, L = 2, 16  # L must be divisible by prod(pool) = 4
    x = jax.random.normal(xkey, (B, L, cfg['d_model']), jnp.float32)

    y = hybrid_sashimi_forward(params, x)
    y = jax.block_until_ready(y)

    assert y.shape == (B, L, cfg['d_model']), y.shape
    assert bool(jnp.all(jnp.isfinite(y)))
    print("KERNEL_OK")
</pallas_src>

<mosaic_0001>
module attributes {stable_mosaic.version = 11 : i64} {
  func.func @_linear_kernel(%arg0: i32, %arg1: i32, %arg2: memref<16x32xbf16, #tpu.memory_space<vmem>>, %arg3: memref<32x32xbf16, #tpu.memory_space<vmem>>, %arg4: memref<1x32xf32, #tpu.memory_space<vmem>>, %arg5: memref<16x32xbf16, #tpu.memory_space<vmem>>) attributes {dimension_semantics = [#tpu.dimension_semantics<parallel>, #tpu.dimension_semantics<parallel>], iteration_bounds = array<i64: 1, 1>, scalar_prefetch = 0 : i64, scratch_operands = 0 : i64, tpu.core_type = #tpu.core_type<tc>, window_params = [{transform_indices = @transform_0, window_bounds = array<i64: 16, 32>}, {transform_indices = @transform_1, window_bounds = array<i64: 32, 32>}, {transform_indices = @transform_2, window_bounds = array<i64: 1, 32>}, {transform_indices = @transform_3, window_bounds = array<i64: 16, 32>}]} {
    %c0 = arith.constant 0 : index
    %c0_0 = arith.constant 0 : index
    %0 = vector.load %arg2[%c0, %c0_0] : memref<16x32xbf16, #tpu.memory_space<vmem>>, vector<16x32xbf16>
    %c0_1 = arith.constant 0 : index
    %c0_2 = arith.constant 0 : index
    %1 = vector.load %arg3[%c0_1, %c0_2] : memref<32x32xbf16, #tpu.memory_space<vmem>>, vector<32x32xbf16>
    %cst = arith.constant dense<0.000000e+00> : vector<16x32xf32>
    %2 = tpu.matmul %0, %1, %cst {dimension_numbers = #tpu.dot_dimension_numbers<[1], [0], [0], [1], [0, 0, 1, 1], [], []>} : vector<16x32xbf16>, vector<32x32xbf16>, vector<16x32xf32> -> vector<16x32xf32>
    %c0_3 = arith.constant 0 : index
    %c0_4 = arith.constant 0 : index
    %3 = vector.load %arg4[%c0_3, %c0_4] : memref<1x32xf32, #tpu.memory_space<vmem>>, vector<1x32xf32>
    %4 = vector.broadcast %3 : vector<1x32xf32> to vector<16x32xf32>
    %5 = arith.addf %2, %4 : vector<16x32xf32>
    %6 = arith.truncf %5 : vector<16x32xf32> to vector<16x32xbf16>
    %c0_5 = arith.constant 0 : index
    %c0_6 = arith.constant 0 : index
    %7 = vector.load %arg5[%c0_5, %c0_6] : memref<16x32xbf16, #tpu.memory_space<vmem>>, vector<16x32xbf16>
    tpu.vector_store %arg5[%c0_5, %c0_6], %6 {strides = array<i32>} : memref<16x32xbf16, #tpu.memory_space<vmem>>, vector<16x32xbf16>,
    return
  }
  func.func @transform_0(%arg0: i32, %arg1: i32) -> (i32, i32) {
    %c0_i32 = arith.constant 0 : i32
    %c0_i32_0 = arith.constant 0 : i32
    return %arg0, %c0_i32 : i32, i32
  }
  func.func @transform_1(%arg0: i32, %arg1: i32) -> (i32, i32) {
    %c0_i32 = arith.constant 0 : i32
    %c0_i32_0 = arith.constant 0 : i32
    return %c0_i32, %arg1 : i32, i32
  }
  func.func @transform_2(%arg0: i32, %arg1: i32) -> (i32, i32) {
    %c0_i32 = arith.constant 0 : i32
    %c0_i32_0 = arith.constant 0 : i32
    return %c0_i32, %arg1 : i32, i32
  }
  func.func @transform_3(%arg0: i32, %arg1: i32) -> (i32, i32) {
    %c0_i32 = arith.constant 0 : i32
    return %arg0, %arg1 : i32, i32
  }
}

</mosaic_0001>

<bundles_post_ra>
// kernel: tpu_custom_call.1
= control target key start
LH: loop header
LB: loop body
LE: loop exit
PB: predicated region body
PF: predicated region fallthrough
CT: control target
= control target key end

     0   :  { %8 = vsyncpa [#allocation3], 0  ;;  %s325_s0 = inlined_call_operand.hbm [shape: bf16[16,32], index: 0, kind: input, shape index: {}]   ;;  %s326_s1 = inlined_call_operand.hbm [shape: bf16[32,32], index: 1, kind: input, shape index: {}]   ;;  %s327_s2 = inlined_call_operand.vmem [shape: f32[1,32], index: 2, kind: input, shape index: {}]   ;;  %s328_s3 = inlined_call_operand.hbm [shape: bf16[16,32], index: 3, kind: output, shape index: {}]  }
   0x1   :  { %9 = vsyncpa [#allocation6], 0 }
   0x2   :  { %10 = vsyncpa [#allocation4], 0  ;;  %s250_s12 = smov [#allocation2]   ;;  %s178_s16 = scalar_lea.hbm %s325_s0, 128 }
   0x3   :  { %s16_s13 = sshll.u32 %s250_s12, 4  ;;  %p179_p0 = scmp.ne.s32.totalorder %s325_s0, %s178_s16  ;;  %s17_s13 = int_to_ptr.vmem [resolvable:$true] %s16_s13 }
   0x4   :  { %p182_p1 = scmp.lt.u32.totalorder %s178_s16, %s325_s0 }
   0x6   :  { %p184_p2 = pnand %p182_p1, %p179_p0 }
   0x8   :  { %187 = shalt.err (!%p184_p2)
}
   0x9   :  { %s188_s21 = scalar_lea.vmem %s17_s13, 128  ;;  %p193_p4 = scmp.lt.s32.totalorder %s17_s13, %s17_s13 }
   0xa   :  { %p189_p3 = scmp.ne.s32.totalorder %s17_s13, %s188_s21  ;;  %p194_p5 = scmp.lt.s32.totalorder %s188_s21, %s188_s21 }
   0xc   :  { %p195_p6 = por %p194_p5, %p193_p4 }
   0xe   :  { %p196_p7 = pnand %p195_p6, %p189_p3 }
  0x10   :  { %199 = shalt.err (!%p196_p7)
}
  0x11   :  { %s251_s22 = smov 64   ;;  %s252_s23 = smov 4  }
  0x12   :  { %22 = dma.hbm_to_vmem [thread:$0]  %s325_s0, 128, %s17_s13, [#allocation3], %s251_s22, %s251_s22, %s252_s23  }
  0x13   :  { %s253_s26 = smov [#allocation5]   ;;  %s200_s30 = scalar_lea.hbm %s326_s1, 256 }
  0x14   :  { %s28_s27 = sshll.u32 %s253_s26, 4  ;;  %p201_p8 = scmp.ne.s32.totalorder %s326_s1, %s200_s30  ;;  %s29_s27 = int_to_ptr.vmem [resolvable:$true] %s28_s27 }
  0x15   :  { %p204_p9 = scmp.lt.u32.totalorder %s200_s30, %s326_s1 }
  0x17   :  { %p206_p10 = pnand %p204_p9, %p201_p8 }
  0x19   :  { %209 = shalt.err (!%p206_p10)
}
  0x1a   :  { %s210_s8 = scalar_lea.vmem %s29_s27, 256  ;;  %p215_p12 = scmp.lt.s32.totalorder %s29_s27, %s29_s27 }
  0x1b   :  { %p211_p11 = scmp.ne.s32.totalorder %s29_s27, %s210_s8  ;;  %p216_p13 = scmp.lt.s32.totalorder %s210_s8, %s210_s8 }
  0x1d   :  { %p217_p0 = por %p216_p13, %p215_p12 }
  0x1f   :  { %p218_p1 = pnand %p217_p0, %p211_p11 }
  0x21   :  { %221 = shalt.err (!%p218_p1)
}
  0x22   :  { %34 = dma.hbm_to_vmem [thread:$0]  %s326_s1, 256, %s29_s27, [#allocation6], %s251_s22, %s251_s22, %s252_s23  }
  0x23   :  { %244 = dma.done.wait [#allocation3], 128  }
  0x24   :  { %245 = vsyncadd [#allocation3], 4294967168 }
  0x25   :  { %246 = dma.done.wait [#allocation6], 256  }
  0x26   :  { %247 = vsyncadd [#allocation6], 4294967040  ;;  %v254_v0 = vmov 0.0   ;;  %vm255_vm0 = vmmov 0   ;;  %v175_v1 = vld [vmem:[#allocation5] sm:$0xff]   ;;  %v176_v2 = vld [vmem:[#allocation5 + $0x8] sm:$0xff]  }
  0x27   :  { %160 = vmatprep.subr.bf16.mxu0 %v254_v0  ;;  %164 = vmatprep.mubr.msk.bf16.mxu0 %vm255_vm0, %v254_v0  ;;  %v177_v3 = vld [vmem:[#allocation2] sm:$0xff]   ;;  %vm74_vm1 = vcmask 261120   ;;  %vm127_vm2 = vcmask 257024   ;;  %s256_s1 = smov [#allocation7]  }
  0x28   :  { %161 = vmatpush3.bf16.msra.mxu0 %v175_v1  ;;  %v148_v4 = vld [vmem:[%s327_s2] ss:$0 sm:$0xff]  ;;  %s135_s12 = sshll.u32 %s256_s1, 4  ;;  %s136_s12 = int_to_ptr.vmem [resolvable:$true] %s135_s12 }
  0x29   :  { %162 = vmatprep.subr.bf16.mxu0 %v254_v0  ;;  %s222_s13 = scalar_lea.vmem %s136_s12, 128  ;;  %p227_p3 = scmp.lt.s32.totalorder %s136_s12, %s136_s12 }
  0x2a   :  { %p223_p2 = scmp.ne.s32.totalorder %s136_s12, %s222_s13  ;;  %p228_p4 = scmp.lt.s32.totalorder %s222_s13, %s222_s13 }
  0x2c   :  { %163 = vmatpush3.bf16.msra.mxu0 %v176_v2  ;;  %p229_p5 = por %p228_p4, %p227_p3 }
  0x2e   :  { %p230_p6 = pnand %p229_p5, %p223_p2 }
  0x2f   :  { %165 = vmatmul.mubr.msk.bf16.vlgmr.msra.gmra.mrb[0].mxu0 %vm74_vm1, %v177_v3 }
 0x102   :  { %v112_v5 = vpop.f32.mrb[0].mxu0 }
 0x103   :  { %v113_v6 = vadd.f32 %v148_v4, %v112_v5  ;;  %v166_v7 = vpop.f32.mrb[1].mxu0 }
 0x104   :  { %v115_v8 = vpop.f32.mrb[2].mxu0 }
 0x105   :  { %v155_v9 = vpack.c.bf16 %v113_v6, %v113_v6  ;;  %v116_v10 = vadd.f32 %v148_v4, %v115_v8  ;;  %v167_v11 = vpop.f32.mrb[3].mxu0 }
 0x107   :  { %v156_v12 = vpack.c.bf16 %v116_v10, %v116_v10  ;;  %128 = vst.msk [vmem:[#allocation7] sm:$0xf] %vm127_vm2, %v155_v9 }
 0x109   :  { %129 = vst.msk [vmem:[#allocation7 + $0x4] sm:$0xf] %vm127_vm2, %v156_v12 }
 0x10a   :  { %233 = shalt.err (!%p230_p6)
}
 0x10b   :  { %s234_s15 = scalar_lea.hbm %s328_s3, 128 }
 0x10c   :  { %p235_p7 = scmp.ne.s32.totalorder %s328_s3, %s234_s15  ;;  %p238_p8 = scmp.lt.u32.totalorder %s234_s15, %s328_s3 }
 0x10e   :  { %p240_p9 = pnand %p238_p8, %p235_p7 }
 0x110   :  { %243 = shalt.err (!%p240_p9)
}
 0x111   :  { %141 = dma.vmem_to_hbm [thread:$0]  %s136_s12, 128, %s328_s3, [#allocation4], %s251_s22, %s251_s22, %s252_s23  }
 0x112   :  { %248 = dma.done.wait [#allocation4], 128  }
 0x113   :  { %249 = vsyncadd [#allocation4], 4294967168 }
 0x114   :  { %145 = vsyncpa [#allocation3], 1 }
 0x115   :  { %146 = vsyncpa [#allocation6], 1 }
 0x116   :  { %147 = vsyncpa [#allocation4], 1 }

</bundles_post_ra>
